<compile_context>
chip_gen: v6e
topology: v6e:2x2x1
jax: 0.10.0
libtpu: 0.0.40
codegen_flags: <defaults>
</compile_context>

<pallas_src>
import functools

import jax
import jax.numpy as jnp
from jax import lax
from jax.experimental import pallas as pl
from jax.experimental.pallas import tpu as pltpu


def _round_up(x, m):
    return (x + m - 1) // m * m


@functools.lru_cache(maxsize=1)
def _vmem_limit_bytes():
    """Per-generation VMEM budget: ~3/4 of physical, capped at 100 MB."""
    try:
        cap = int(pltpu.get_tpu_info().vmem_capacity_bytes)
        if cap <= 0:
            raise ValueError("bad vmem capacity")
    except Exception:
        cap = 64 * 1024 * 1024          # conservative fallback (v7x per-core)
    return min(cap * 3 // 4, 100 * 1024 * 1024)


def _largest_block(n_pad, cap):
    """Largest multiple of 128 that divides n_pad and is <= cap."""
    cap = max(128, min(cap, n_pad))
    best = 128
    d = 128
    while d <= cap:
        if n_pad % d == 0:
            best = d
        d += 128
    return best


# --------------------------------------------------------------------------
# kernel 1: HW2 = relu(A @ P1 + b1) @ W2        (bf16 streams, f32 accumulate)
# --------------------------------------------------------------------------
def _layer1_kernel(a_ref, p_ref, w2_ref, b1_ref, o_ref, acc_ref):
    k = pl.program_id(1)
    block_k = a_ref.shape[1]

    @pl.when(k == 0)
    def _():
        acc_ref[...] = jnp.broadcast_to(b1_ref[...], acc_ref.shape)

    start = pl.multiple_of(k * block_k, block_k)
    p_blk = p_ref[pl.ds(start, block_k), :]          # resident P, sliced in VMEM
    acc_ref[...] += jnp.dot(a_ref[...], p_blk,
                            preferred_element_type=jnp.float32)

    @pl.when(k == pl.num_programs(1) - 1)
    def _():
        h = jnp.maximum(acc_ref[...], 0.0).astype(jnp.bfloat16)
        o_ref[...] = jnp.dot(
            h, w2_ref[...], preferred_element_type=jnp.float32
        ).astype(o_ref.dtype)


def _gcn_layer1(a_p, p1_p, w2_p, b1_p, *, block_m, block_k):
    n_pad = a_p.shape[0]
    hid_pad = p1_p.shape[1]
    out_pad = w2_p.shape[1]
    return pl.pallas_call(
        _layer1_kernel,
        out_shape=jax.ShapeDtypeStruct((n_pad, out_pad), jnp.bfloat16),
        grid_spec=pltpu.PrefetchScalarGridSpec(
            num_scalar_prefetch=0,
            grid=(n_pad // block_m, n_pad // block_k),
            in_specs=[
                pl.BlockSpec((block_m, block_k), lambda i, k: (i, k)),   # A tile
                pl.BlockSpec((n_pad, hid_pad), lambda i, k: (0, 0)),     # P resident
                pl.BlockSpec((hid_pad, out_pad), lambda i, k: (0, 0)),   # W2 resident
                pl.BlockSpec((1, hid_pad), lambda i, k: (0, 0)),         # b1 resident
            ],
            out_specs=pl.BlockSpec((block_m, out_pad), lambda i, k: (i, 0)),
            scratch_shapes=[pltpu.VMEM((block_m, hid_pad), jnp.float32)],
        ),
        compiler_params=pltpu.CompilerParams(
            dimension_semantics=("parallel", "arbitrary"),
            vmem_limit_bytes=_vmem_limit_bytes()),
        cost_estimate=pl.CostEstimate(
            flops=int(2 * n_pad * n_pad * hid_pad
                      + 2 * n_pad * hid_pad * out_pad),
            transcendentals=0,
            bytes_accessed=int(a_p.size * 2 + p1_p.size * 2 + w2_p.size * 2
                               + n_pad * out_pad * 2)),
    )(a_p, p1_p, w2_p, b1_p)


# --------------------------------------------------------------------------
# kernel 2: OUT = log_softmax(A @ HW2 + b2)   (accumulate into resident f32 out)
# --------------------------------------------------------------------------
def _make_layer2_kernel(out_c):
    def kernel(a_ref, p_ref, b2_ref, o_ref):
        k = pl.program_id(1)
        block_k = a_ref.shape[1]

        @pl.when(k == 0)
        def _():
            o_ref[...] = jnp.broadcast_to(b2_ref[...], o_ref.shape)

        start = pl.multiple_of(k * block_k, block_k)
        p_blk = p_ref[pl.ds(start, block_k), :]
        o_ref[...] += jnp.dot(a_ref[...], p_blk,
                              preferred_element_type=jnp.float32)

        @pl.when(k == pl.num_programs(1) - 1)
        def _():
            z = o_ref[...]
            col = lax.broadcasted_iota(jnp.int32, z.shape, 1)
            valid = col < out_c
            zm = jnp.where(valid, z, -jnp.inf)
            m = jnp.max(zm, axis=-1, keepdims=True)
            s = zm - m
            lse = jnp.log(jnp.sum(jnp.exp(s), axis=-1, keepdims=True))
            o_ref[...] = jnp.where(valid, s - lse, 0.0)

    return kernel


def _gcn_layer2(a_p, hw2_p, b2_p, out_c, *, block_m, block_k):
    n_pad = a_p.shape[0]
    out_pad = hw2_p.shape[1]
    return pl.pallas_call(
        _make_layer2_kernel(out_c),
        out_shape=jax.ShapeDtypeStruct((n_pad, out_pad), jnp.float32),
        grid_spec=pltpu.PrefetchScalarGridSpec(
            num_scalar_prefetch=0,
            grid=(n_pad // block_m, n_pad // block_k),
            in_specs=[
                pl.BlockSpec((block_m, block_k), lambda i, k: (i, k)),   # A tile
                pl.BlockSpec((n_pad, out_pad), lambda i, k: (0, 0)),     # HW2 resident
                pl.BlockSpec((1, out_pad), lambda i, k: (0, 0)),         # b2 resident
            ],
            out_specs=pl.BlockSpec((block_m, out_pad), lambda i, k: (i, 0)),
        ),
        compiler_params=pltpu.CompilerParams(
            dimension_semantics=("parallel", "arbitrary"),
            vmem_limit_bytes=_vmem_limit_bytes()),
        cost_estimate=pl.CostEstimate(
            flops=int(2 * n_pad * n_pad * out_pad),
            transcendentals=int(n_pad * out_pad),
            bytes_accessed=int(a_p.size * 2 + hw2_p.size * 2
                               + n_pad * out_pad * 4)),
    )(a_p, hw2_p, b2_p)


# --------------------------------------------------------------------------
# full GNN forward
# --------------------------------------------------------------------------
def gnn_forward(a_pad, x, w1, b1, w2, b2):
    """a_pad: (n_pad, n_pad) bf16 padded normalized adjacency (built once)."""
    n, _ = x.shape
    n_pad = a_pad.shape[0]
    hid_c = w1.shape[1]
    out_c = w2.shape[1]
    hid_pad = _round_up(hid_c, 128)
    out_pad = _round_up(out_c, 128)
    bf16, f32 = jnp.bfloat16, jnp.float32

    # Big A tiles (amortize ~0.35us/grid-step), both dividing n_pad; keep at
    # least 2 row blocks so v7x's two TensorCores both get work.
    block_k = _largest_block(n_pad, 2048)
    block_m = _largest_block(n_pad, min(1024, n_pad // 2))

    # Layer-1 projection X @ W1 is a skinny (n, in_c) matmul -> plain XLA.
    p1 = jnp.dot(x.astype(bf16), w1.astype(bf16),
                 preferred_element_type=f32).astype(bf16)
    p1_p = jnp.zeros((n_pad, hid_pad), bf16).at[:n, :hid_c].set(p1)
    b1_p = jnp.zeros((1, hid_pad), f32).at[:, :hid_c].set(b1.reshape(1, -1))
    w2_p = jnp.zeros((hid_pad, out_pad), bf16).at[:hid_c, :out_c].set(
        w2.astype(bf16))
    b2_p = jnp.zeros((1, out_pad), f32).at[:, :out_c].set(b2.reshape(1, -1))

    # layer 1 (+ fused layer-2 projection):  HW2 = relu(A @ P1 + b1) @ W2
    hw2 = _gcn_layer1(a_pad, p1_p, w2_p, b1_p,
                      block_m=block_m, block_k=block_k)
    # layer 2:  log_softmax(A @ HW2 + b2) over the first out_c columns
    z = _gcn_layer2(a_pad, hw2, b2_p, out_c,
                    block_m=block_m, block_k=block_k)
    return z[:n, :out_c]


# --------------------------------------------------------------------------
# glue: dense GCN-normalized adjacency (plain JAX, built once outside forward)
# --------------------------------------------------------------------------
def normalized_adjacency(edge_index, num_nodes):
    src = edge_index[0]
    dst = edge_index[1]
    self_idx = jnp.arange(num_nodes, dtype=edge_index.dtype)
    src = jnp.concatenate([src, self_idx])
    dst = jnp.concatenate([dst, self_idx])
    a = jnp.zeros((num_nodes, num_nodes), jnp.float32).at[dst, src].add(1.0)
    deg = jnp.sum(a, axis=1)
    dinv = jnp.where(deg > 0, lax.rsqrt(deg), 0.0)
    return dinv[:, None] * a * dinv[None, :]


def pad_adjacency(a_hat, n_pad):
    """Pad + cast to bf16 once, outside the per-forward path."""
    n = a_hat.shape[0]
    return jnp.zeros((n_pad, n_pad), jnp.bfloat16).at[:n, :n].set(
        a_hat.astype(jnp.bfloat16))


def ref_forward(a_hat, x, w1, b1, w2, b2):
    """Pure-JAX reference mirroring the kernel's bf16 casts."""
    bf16 = jnp.bfloat16
    a = a_hat.astype(bf16)
    p1 = jnp.dot(x.astype(bf16), w1.astype(bf16),
                 preferred_element_type=jnp.float32).astype(bf16)
    h = jnp.maximum(
        jnp.dot(a, p1, preferred_element_type=jnp.float32)
        + b1.reshape(1, -1), 0.0).astype(bf16)
    hw2 = jnp.dot(h, w2.astype(bf16),
                  preferred_element_type=jnp.float32).astype(bf16)
    z = jnp.dot(a, hw2, preferred_element_type=jnp.float32) + b2.reshape(1, -1)
    return jax.nn.log_softmax(z, axis=1)


if __name__ == "__main__":
    # Small shapes consistent with the module: N nodes, in=4, hidden=32, out=4.
    N, IN_C, HID_C, OUT_C = 8, 4, 32, 4

    key = jax.random.PRNGKey(0)
    k_x, k_w1, k_w2 = jax.random.split(key, 3)

    x = jax.random.normal(k_x, (N, IN_C), dtype=jnp.float32)

    # Deterministic graph: bidirectional ring over N nodes -> [2, 2N] edges.
    idx = jnp.arange(N, dtype=jnp.int32)
    nxt = (idx + 1) % N
    edge_index = jnp.stack(
        [jnp.concatenate([idx, nxt]), jnp.concatenate([nxt, idx])], axis=0)

    def glorot(k, shape):
        fan_in, fan_out = shape
        lim = jnp.sqrt(6.0 / (fan_in + fan_out))
        return jax.random.uniform(k, shape, jnp.float32, -lim, lim)

    w1 = glorot(k_w1, (IN_C, HID_C))
    b1 = jnp.zeros((HID_C,), jnp.float32)
    w2 = glorot(k_w2, (HID_C, OUT_C))
    b2 = jnp.zeros((OUT_C,), jnp.float32)

    n_pad = _round_up(N, 256)
    a_hat = normalized_adjacency(edge_index, N)   # f32, for the reference
    a_pad = pad_adjacency(a_hat, n_pad)           # bf16, built once, reused

    fwd = jax.jit(gnn_forward)
    out = jax.block_until_ready(fwd(a_pad, x, w1, b1, w2, b2))

    ref = ref_forward(a_hat, x, w1, b1, w2, b2)
    assert out.shape == (N, OUT_C)
    assert bool(jnp.all(jnp.isfinite(out))), "non-finite output"
    assert jnp.allclose(out, ref, atol=1e-4, rtol=1e-4), "mismatch vs reference"

    print("KERNEL_OK")
</pallas_src>

<mosaic_0001>
module attributes {stable_mosaic.version = 11 : i64} {
  func.func @_layer1_kernel(%arg0: i32, %arg1: i32, %arg2: memref<128x256xbf16, #tpu.memory_space<vmem>>, %arg3: memref<256x128xbf16, #tpu.memory_space<vmem>>, %arg4: memref<128x128xbf16, #tpu.memory_space<vmem>>, %arg5: memref<1x128xf32, #tpu.memory_space<vmem>>, %arg6: memref<128x128xbf16, #tpu.memory_space<vmem>>, %arg7: memref<128x128xf32, #tpu.memory_space<vmem>>) attributes {dimension_semantics = [#tpu.dimension_semantics<parallel>, #tpu.dimension_semantics<arbitrary>], iteration_bounds = array<i64: 2, 1>, scalar_prefetch = 0 : i64, scratch_operands = 1 : i64, tpu.core_type = #tpu.core_type<tc>, window_params = [{transform_indices = @transform_0, window_bounds = array<i64: 128, 256>}, {pipeline_mode = #tpu.pipeline_mode<synchronous>, transform_indices = @transform_1, window_bounds = array<i64: 256, 128>}, {pipeline_mode = #tpu.pipeline_mode<synchronous>, transform_indices = @transform_2, window_bounds = array<i64: 128, 128>}, {pipeline_mode = #tpu.pipeline_mode<synchronous>, transform_indices = @transform_3, window_bounds = array<i64: 1, 128>}, {transform_indices = @transform_4, window_bounds = array<i64: 128, 128>}]} {
    %c0_i32 = arith.constant 0 : i32
    %0 = arith.cmpi eq, %arg1, %c0_i32 : i32
    %1 = arith.extui %0 : i1 to i32
    %c0_i32_0 = arith.constant 0 : i32
    %2 = arith.cmpi ne, %1, %c0_i32_0 : i32
    scf.if %2 {
      %c0_9 = arith.constant 0 : index
      %c0_10 = arith.constant 0 : index
      %15 = vector.load %arg5[%c0_9, %c0_10] : memref<1x128xf32, #tpu.memory_space<vmem>>, vector<1x128xf32>
      %16 = vector.shape_cast %15 : vector<1x128xf32> to vector<1x128xf32>
      %17 = vector.broadcast %16 : vector<1x128xf32> to vector<128x128xf32>
      %c0_11 = arith.constant 0 : index
      %c0_12 = arith.constant 0 : index
      %18 = vector.load %arg7[%c0_11, %c0_12] : memref<128x128xf32, #tpu.memory_space<vmem>>, vector<128x128xf32>
      tpu.vector_store %arg7[%c0_11, %c0_12], %17 {strides = array<i32>} : memref<128x128xf32, #tpu.memory_space<vmem>>, vector<128x128xf32>,
    } else {
    }
    %c256_i32 = arith.constant 256 : i32
    %3 = arith.muli %arg1, %c256_i32 : i32
    %4 = tpu.assume_multiple %3, 256 : i32
    %5 = arith.index_cast %4 : i32 to index
    %c0 = arith.constant 0 : index
    %6 = vector.load %arg3[%5, %c0] : memref<256x128xbf16, #tpu.memory_space<vmem>>, vector<256x128xbf16>
    %c0_1 = arith.constant 0 : index
    %c0_2 = arith.constant 0 : index
    %7 = vector.load %arg7[%c0_1, %c0_2] : memref<128x128xf32, #tpu.memory_space<vmem>>, vector<128x128xf32>
    %c0_3 = arith.constant 0 : index
    %c0_4 = arith.constant 0 : index
    %8 = vector.load %arg2[%c0_3, %c0_4] : memref<128x256xbf16, #tpu.memory_space<vmem>>, vector<128x256xbf16>
    %cst = arith.constant dense<0.000000e+00> : vector<128x128xf32>
    %9 = tpu.matmul %8, %6, %cst {dimension_numbers = #tpu.dot_dimension_numbers<[1], [0], [0], [1], [0, 0, 1, 1], [], []>} : vector<128x256xbf16>, vector<256x128xbf16>, vector<128x128xf32> -> vector<128x128xf32>
    %10 = arith.addf %7, %9 : vector<128x128xf32>
    %c0_5 = arith.constant 0 : index
    %c0_6 = arith.constant 0 : index
    %11 = vector.load %arg7[%c0_5, %c0_6] : memref<128x128xf32, #tpu.memory_space<vmem>>, vector<128x128xf32>
    tpu.vector_store %arg7[%c0_5, %c0_6], %10 {strides = array<i32>} : memref<128x128xf32, #tpu.memory_space<vmem>>, vector<128x128xf32>,
    %c0_i32_7 = arith.constant 0 : i32
    %12 = arith.cmpi eq, %arg1, %c0_i32_7 : i32
    %13 = arith.extui %12 : i1 to i32
    %c0_i32_8 = arith.constant 0 : i32
    %14 = arith.cmpi ne, %13, %c0_i32_8 : i32
    scf.if %14 {
      %c0_9 = arith.constant 0 : index
      %c0_10 = arith.constant 0 : index
      %15 = vector.load %arg7[%c0_9, %c0_10] : memref<128x128xf32, #tpu.memory_space<vmem>>, vector<128x128xf32>
      %cst_11 = arith.constant 0.000000e+00 : f32
      %16 = vector.broadcast %cst_11 : f32 to vector<128x128xf32>
      %17 = arith.maximumf %15, %16 : vector<128x128xf32>
      %18 = arith.truncf %17 : vector<128x128xf32> to vector<128x128xbf16>
      %c0_12 = arith.constant 0 : index
      %c0_13 = arith.constant 0 : index
      %19 = vector.load %arg4[%c0_12, %c0_13] : memref<128x128xbf16, #tpu.memory_space<vmem>>, vector<128x128xbf16>
      %cst_14 = arith.constant dense<0.000000e+00> : vector<128x128xf32>
      %20 = tpu.matmul %18, %19, %cst_14 {dimension_numbers = #tpu.dot_dimension_numbers<[1], [0], [0], [1], [0, 0, 1, 1], [], []>} : vector<128x128xbf16>, vector<128x128xbf16>, vector<128x128xf32> -> vector<128x128xf32>
      %21 = arith.truncf %20 : vector<128x128xf32> to vector<128x128xbf16>
      %c0_15 = arith.constant 0 : index
      %c0_16 = arith.constant 0 : index
      %22 = vector.load %arg6[%c0_15, %c0_16] : memref<128x128xbf16, #tpu.memory_space<vmem>>, vector<128x128xbf16>
      tpu.vector_store %arg6[%c0_15, %c0_16], %21 {strides = array<i32>} : memref<128x128xbf16, #tpu.memory_space<vmem>>, vector<128x128xbf16>,
    } else {
    }
    return
  }
  func.func @transform_0(%arg0: i32, %arg1: i32) -> (i32, i32) {
    %c0_i32 = arith.constant 0 : i32
    return %arg0, %arg1 : i32, i32
  }
  func.func @transform_1(%arg0: i32, %arg1: i32) -> (i32, i32) {
    %c0_i32 = arith.constant 0 : i32
    %c0_i32_0 = arith.constant 0 : i32
    %c0_i32_1 = arith.constant 0 : i32
    return %c0_i32, %c0_i32_0 : i32, i32
  }
  func.func @transform_2(%arg0: i32, %arg1: i32) -> (i32, i32) {
    %c0_i32 = arith.constant 0 : i32
    %c0_i32_0 = arith.constant 0 : i32
    %c0_i32_1 = arith.constant 0 : i32
    return %c0_i32, %c0_i32_0 : i32, i32
  }
  func.func @transform_3(%arg0: i32, %arg1: i32) -> (i32, i32) {
    %c0_i32 = arith.constant 0 : i32
    %c0_i32_0 = arith.constant 0 : i32
    %c0_i32_1 = arith.constant 0 : i32
    return %c0_i32, %c0_i32_0 : i32, i32
  }
  func.func @transform_4(%arg0: i32, %arg1: i32) -> (i32, i32) {
    %c0_i32 = arith.constant 0 : i32
    %c0_i32_0 = arith.constant 0 : i32
    return %arg0, %c0_i32 : i32, i32
  }
}

module attributes {stable_mosaic.version = 11 : i64} {
  func.func @kernel(%arg0: i32, %arg1: i32, %arg2: memref<128x256xbf16, #tpu.memory_space<vmem>>, %arg3: memref<256x128xbf16, #tpu.memory_space<vmem>>, %arg4: memref<1x128xf32, #tpu.memory_space<vmem>>, %arg5: memref<128x128xf32, #tpu.memory_space<vmem>>) attributes {dimension_semantics = [#tpu.dimension_semantics<parallel>, #tpu.dimension_semantics<arbitrary>], iteration_bounds = array<i64: 2, 1>, scalar_prefetch = 0 : i64, scratch_operands = 0 : i64, tpu.core_type = #tpu.core_type<tc>, window_params = [{transform_indices = @transform_0, window_bounds = array<i64: 128, 256>}, {pipeline_mode = #tpu.pipeline_mode<synchronous>, transform_indices = @transform_1, window_bounds = array<i64: 256, 128>}, {pipeline_mode = #tpu.pipeline_mode<synchronous>, transform_indices = @transform_2, window_bounds = array<i64: 1, 128>}, {transform_indices = @transform_3, window_bounds = array<i64: 128, 128>}]} {
    %c0_i32 = arith.constant 0 : i32
    %0 = arith.cmpi eq, %arg1, %c0_i32 : i32
    %1 = arith.extui %0 : i1 to i32
    %c0_i32_0 = arith.constant 0 : i32
    %2 = arith.cmpi ne, %1, %c0_i32_0 : i32
    scf.if %2 {
      %c0_9 = arith.constant 0 : index
      %c0_10 = arith.constant 0 : index
      %15 = vector.load %arg4[%c0_9, %c0_10] : memref<1x128xf32, #tpu.memory_space<vmem>>, vector<1x128xf32>
      %16 = vector.shape_cast %15 : vector<1x128xf32> to vector<1x128xf32>
      %17 = vector.broadcast %16 : vector<1x128xf32> to vector<128x128xf32>
      %c0_11 = arith.constant 0 : index
      %c0_12 = arith.constant 0 : index
      %18 = vector.load %arg5[%c0_11, %c0_12] : memref<128x128xf32, #tpu.memory_space<vmem>>, vector<128x128xf32>
      tpu.vector_store %arg5[%c0_11, %c0_12], %17 {strides = array<i32>} : memref<128x128xf32, #tpu.memory_space<vmem>>, vector<128x128xf32>,
    } else {
    }
    %c256_i32 = arith.constant 256 : i32
    %3 = arith.muli %arg1, %c256_i32 : i32
    %4 = tpu.assume_multiple %3, 256 : i32
    %5 = arith.index_cast %4 : i32 to index
    %c0 = arith.constant 0 : index
    %6 = vector.load %arg3[%5, %c0] : memref<256x128xbf16, #tpu.memory_space<vmem>>, vector<256x128xbf16>
    %c0_1 = arith.constant 0 : index
    %c0_2 = arith.constant 0 : index
    %7 = vector.load %arg5[%c0_1, %c0_2] : memref<128x128xf32, #tpu.memory_space<vmem>>, vector<128x128xf32>
    %c0_3 = arith.constant 0 : index
    %c0_4 = arith.constant 0 : index
    %8 = vector.load %arg2[%c0_3, %c0_4] : memref<128x256xbf16, #tpu.memory_space<vmem>>, vector<128x256xbf16>
    %cst = arith.constant dense<0.000000e+00> : vector<128x128xf32>
    %9 = tpu.matmul %8, %6, %cst {dimension_numbers = #tpu.dot_dimension_numbers<[1], [0], [0], [1], [0, 0, 1, 1], [], []>} : vector<128x256xbf16>, vector<256x128xbf16>, vector<128x128xf32> -> vector<128x128xf32>
    %10 = arith.addf %7, %9 : vector<128x128xf32>
    %c0_5 = arith.constant 0 : index
    %c0_6 = arith.constant 0 : index
    %11 = vector.load %arg5[%c0_5, %c0_6] : memref<128x128xf32, #tpu.memory_space<vmem>>, vector<128x128xf32>
    tpu.vector_store %arg5[%c0_5, %c0_6], %10 {strides = array<i32>} : memref<128x128xf32, #tpu.memory_space<vmem>>, vector<128x128xf32>,
    %c0_i32_7 = arith.constant 0 : i32
    %12 = arith.cmpi eq, %arg1, %c0_i32_7 : i32
    %13 = arith.extui %12 : i1 to i32
    %c0_i32_8 = arith.constant 0 : i32
    %14 = arith.cmpi ne, %13, %c0_i32_8 : i32
    scf.if %14 {
      %c0_9 = arith.constant 0 : index
      %c0_10 = arith.constant 0 : index
      %15 = vector.load %arg5[%c0_9, %c0_10] : memref<128x128xf32, #tpu.memory_space<vmem>>, vector<128x128xf32>
      %16 = tpu.iota {dimensions = array<i32: 1>} : vector<128x128xi32>
      %c4_i32 = arith.constant 4 : i32
      %17 = vector.broadcast %c4_i32 : i32 to vector<128x128xi32>
      %18 = arith.cmpi slt, %16, %17 : vector<128x128xi32>
      %cst_11 = arith.constant 0xFF800000 : f32
      %19 = vector.broadcast %cst_11 : f32 to vector<128x128xf32>
      %20 = arith.select %18, %15, %19 : vector<128x128xi1>, vector<128x128xf32>
      %cst_12 = arith.constant dense<0xFF800000> : vector<128xf32>
      %21 = vector.multi_reduction <maximumf>, %20, %cst_12 [1] : vector<128x128xf32> to vector<128xf32>
      %22 = vector.shape_cast %21 : vector<128xf32> to vector<128x1xf32>
      %23 = vector.broadcast %22 : vector<128x1xf32> to vector<128x128xf32>
      %24 = arith.subf %20, %23 : vector<128x128xf32>
      %25 = math.exp %24 : vector<128x128xf32>
      %cst_13 = arith.constant dense<0.000000e+00> : vector<128xf32>
      %26 = vector.multi_reduction <add>, %25, %cst_13 [1] : vector<128x128xf32> to vector<128xf32>
      %27 = vector.shape_cast %26 : vector<128xf32> to vector<128x1xf32>
      %28 = math.log %27 : vector<128x1xf32>
      %29 = vector.broadcast %28 : vector<128x1xf32> to vector<128x128xf32>
      %30 = arith.subf %24, %29 : vector<128x128xf32>
      %cst_14 = arith.constant 0.000000e+00 : f32
      %31 = vector.broadcast %cst_14 : f32 to vector<128x128xf32>
      %32 = arith.select %18, %30, %31 : vector<128x128xi1>, vector<128x128xf32>
      %c0_15 = arith.constant 0 : index
      %c0_16 = arith.constant 0 : index
      %33 = vector.load %arg5[%c0_15, %c0_16] : memref<128x128xf32, #tpu.memory_space<vmem>>, vector<128x128xf32>
      tpu.vector_store %arg5[%c0_15, %c0_16], %32 {strides = array<i32>} : memref<128x128xf32, #tpu.memory_space<vmem>>, vector<128x128xf32>,
    } else {
    }
    return
  }
  func.func @transform_0(%arg0: i32, %arg1: i32) -> (i32, i32) {
    %c0_i32 = arith.constant 0 : i32
    return %arg0, %arg1 : i32, i32
  }
  func.func @transform_1(%arg0: i32, %arg1: i32) -> (i32, i32) {
    %c0_i32 = arith.constant 0 : i32
    %c0_i32_0 = arith.constant 0 : i32
    %c0_i32_1 = arith.constant 0 : i32
    return %c0_i32, %c0_i32_0 : i32, i32
  }
  func.func @transform_2(%arg0: i32, %arg1: i32) -> (i32, i32) {
    %c0_i32 = arith.constant 0 : i32
    %c0_i32_0 = arith.constant 0 : i32
    %c0_i32_1 = arith.constant 0 : i32
    return %c0_i32, %c0_i32_0 : i32, i32
  }
  func.func @transform_3(%arg0: i32, %arg1: i32) -> (i32, i32) {
    %c0_i32 = arith.constant 0 : i32
    %c0_i32_0 = arith.constant 0 : i32
    return %arg0, %c0_i32 : i32, i32
  }
}

</mosaic_0001>

<bundles_post_ra>
// kernel: gnn_forward.2
= control target key start
LH: loop header
LB: loop body
LE: loop exit
PB: predicated region body
PF: predicated region fallthrough
CT: control target
= control target key end

     0   :  { %s1357_s15 = smov 0   ;;  %s1359_s16 = smov 0   ;;  %s1505_s0 = inlined_call_operand.vmem [shape: bf16[256,256], index: 0, kind: input, shape index: {}]   ;;  %s1506_s1 = inlined_call_operand.vmem [shape: bf16[256,128], index: 1, kind: input, shape index: {}]   ;;  %s1507_s2 = inlined_call_operand.vmem [shape: bf16[128,128], index: 2, kind: input, shape index: {}]   ;;  %s1508_s3 = inlined_call_operand.vmem [shape: f32[1,128], index: 3, kind: input, shape index: {}]   ;;  %s1509_s4 = inlined_call_operand.vmem [shape: bf16[256,128], index: 4, kind: output, shape index: {}]  }
   0x1   :  { %s1361_s17 = smov 0  }
   0x2 LB: > { %s26_s18 = sadd.s32 1, %s1326_s16  ;;  %p995_p0 = scmp.ge.s32.totalorder %s1330_s17, 1  ;;  %s1330_s17 = sphi %s1361_s17, %s14_s17   ;;  %s1326_s16 = sphi %s1359_s16, %s1511_s16   ;;  %s1322_s15 = sphi %s1357_s15, %s1510_s15  }
   0x3   : > { %p28_p1 = scmp.ge.s32.totalorder %s26_s18, 2  ;;  %p183_p2 = scmp.lt.s32.totalorder %s1330_s17, 3 }
   0x5   : > { %s1513_s18 = smov (%p28_p1, %s26_s18), 0  ;;  %p184_p3 = pnand %p995_p0, %p183_p2 }
   0x6   : > { %s996_s21 = sshll.u32 (!%p184_p3), %s1322_s15, 4 }
   0x7   : > { %187 = sbr.rel (%p184_p3) target bundleno = 510 (0x1fe), region = 36  ;;  %p216_p4 = scmp.lt.s32.totalorder (!%p184_p3), %s996_s21, 31 }
   0xc   : > { %v1260_v0 = vld [vmem:[%s1506_s1 + $0x78] sm:$0xff]   ;;  %v1262_v2 = vld [vmem:[%s1506_s1 + $0x70] sm:$0xff]   ;;  %v1264_v4 = vld [vmem:[%s1506_s1 + $0x68] sm:$0xff]   ;;  %s1515_s21 = smov (!%p216_p4, %s996_s21), 31 }
   0xd   : > { %v1261_v1 = vld [vmem:[%s1506_s1 + $0x38] sm:$0xff]   ;;  %1124 = vmatprep.subr.bf16.mxu0 %v1260_v0  ;;  %v1263_v3 = vld [vmem:[%s1506_s1 + $0x30] sm:$0xff]   ;;  %v1265_v5 = vld [vmem:[%s1506_s1 + $0x28] sm:$0xff]   ;;  %s1060_s10 = sshll.u32 %s1515_s21, 3  ;;  %s1000_s30 = sshll.u32 %s1515_s21, 2 }
   0xe   : > { %1125 = vmatpush3.bf16.msra.mxu0 %v1261_v1  ;;  %v1266_v6 = vld [vmem:[%s1506_s1 + $0x60] sm:$0xff]   ;;  %v1268_v8 = vld [vmem:[%s1506_s1 + $0x58] sm:$0xff]   ;;  %s1408_s15 = scalar_lea.vmem %s1505_s0, %s1060_s10  ;;  %v1270_v10 = vld [vmem:[%s1506_s1 + $0x50] sm:$0xff]   ;;  %s230_s7 = scalar_lea.vmem %s1509_s4, %s1000_s30 }
   0xf   : > { %1126 = vmatprep.subr.bf16.mxu0 %v1262_v2  ;;  %v1267_v7 = vld [vmem:[%s1506_s1 + $0x20] sm:$0xff]   ;;  %v1269_v9 = vld [vmem:[%s1506_s1 + $0x18] sm:$0xff]   ;;  %v1271_v12 = vld [vmem:[%s1506_s1 + $0x10] sm:$0xff]  }
  0x10   : > { %v1278_v11 = vld [vmem:[%s1408_s15 + $0x4] ss:$8 sps:$4 sm:$0xff]   ;;  %v1300_v17 = vld [vmem:[%s1507_s2 + $0x38] sm:$0xff]   ;;  %v1276_v18 = vld [vmem:[%s1408_s15] ss:$8 sps:$4 sm:$0xff]  }
  0x11   : > { %537 = vmatprep.mubr.bf16.mxu0 %v1278_v11  ;;  %v1272_v13 = vld [vmem:[%s1506_s1 + $0x48] sm:$0xff]   ;;  %v1274_v15 = vld [vmem:[%s1506_s1 + $0x40] sm:$0xff]   ;;  %v1301_v19 = vld [vmem:[%s1507_s2 + $0x30] sm:$0xff]   ;;  %1204 = vmatprep.subr.bf16.mxu1 %v1300_v17 }
  0x12   : > { %1127 = vmatpush3.bf16.msra.mxu0 %v1263_v3  ;;  %v1273_v14 = vld [vmem:[%s1506_s1 + $0x8] sm:$0xff]   ;;  %v1275_v16 = vld [vmem:[%s1506_s1] sm:$0xff]   ;;  %v1279_v20 = vld [vmem:[%s1408_s15 + $0x14] ss:$8 sps:$4 sm:$0xff]   ;;  %1205 = vmatpush3.bf16.msra.mxu1 %v1300_v17 }
  0x13   : > { %1128 = vmatprep.subr.bf16.mxu0 %v1264_v4  ;;  %v1302_v21 = vld [vmem:[%s1507_s2 + $0x28] sm:$0xff]   ;;  %1206 = vmatprep.subr.bf16.mxu1 %v1301_v19  ;;  %v1281_v22 = vld [vmem:[%s1408_s15 + $0x10] ss:$8 sps:$4 sm:$0xff]   ;;  %v1285_v25 = vld [vmem:[%s1408_s15 + $0x34] ss:$8 sps:$4 sm:$0xff]  }
  0x14   : > { %v1282_v23 = vld [vmem:[%s1408_s15 + $0x24] ss:$8 sps:$4 sm:$0xff]   ;;  %v1284_v24 = vld [vmem:[%s1408_s15 + $0x20] ss:$8 sps:$4 sm:$0xff]   ;;  %v1287_v26 = vld [vmem:[%s1408_s15 + $0x30] ss:$8 sps:$4 sm:$0xff]  }
  0x15   : > { %v1288_v27 = vld [vmem:[%s1408_s15 + $0x44] ss:$8 sps:$4 sm:$0xff]   ;;  %v1290_v28 = vld [vmem:[%s1408_s15 + $0x40] ss:$8 sps:$4 sm:$0xff]   ;;  %v1291_v29 = vld [vmem:[%s1408_s15 + $0x54] ss:$8 sps:$4 sm:$0xff]  }
  0x16   : > { %1129 = vmatpush3.bf16.msra.mxu0 %v1265_v5  ;;  %1207 = vmatpush3.bf16.msra.mxu1 %v1301_v19  ;;  %v1293_v30 = vld [vmem:[%s1408_s15 + $0x50] ss:$8 sps:$4 sm:$0xff]   ;;  %v1294_v31 = vld [vmem:[%s1408_s15 + $0x64] ss:$8 sps:$4 sm:$0xff]   ;;  %v1296_v32 = vld [vmem:[%s1408_s15 + $0x60] ss:$8 sps:$4 sm:$0xff]  }
  0x17   : > { %1130 = vmatprep.subr.bf16.mxu0 %v1266_v6  ;;  %1208 = vmatprep.subr.bf16.mxu1 %v1302_v21  ;;  %v1297_v33 = vld [vmem:[%s1408_s15 + $0x74] ss:$8 sps:$4 sm:$0xff]   ;;  %v1299_v34 = vld [vmem:[%s1408_s15 + $0x70] ss:$8 sps:$4 sm:$0xff]   ;;  %v1303_v35 = vld [vmem:[%s1507_s2 + $0x20] sm:$0xff]  }
  0x18   : > { %v1304_v36 = vld [vmem:[%s1507_s2 + $0x18] sm:$0xff]   ;;  %v1305_v37 = vld [vmem:[%s1507_s2 + $0x10] sm:$0xff]   ;;  %v1306_v38 = vld [vmem:[%s1507_s2 + $0x8] sm:$0xff]  }
  0x19   : > { %v1307_v39 = vld [vmem:[%s1507_s2] sm:$0xff]  }
  0x1a   : > { %1131 = vmatpush3.bf16.msra.mxu0 %v1267_v7  ;;  %1209 = vmatpush3.bf16.msra.mxu1 %v1302_v21  ;;  %v1474_v44 = vld [vmem:[%s1508_s3] ss:$0 sm:$0xff] }
  0x1b   : > { %1132 = vmatprep.subr.bf16.mxu0 %v1268_v8  ;;  %1210 = vmatprep.subr.bf16.mxu1 %v1303_v35 }
  0x1e   : > { %1133 = vmatpush3.bf16.msra.mxu0 %v1269_v9  ;;  %1211 = vmatpush3.bf16.msra.mxu1 %v1303_v35 }
  0x1f   : > { %1134 = vmatprep.subr.bf16.mxu0 %v1270_v10  ;;  %1212 = vmatprep.subr.bf16.mxu1 %v1304_v36 }
  0x22   : > { %1135 = vmatpush3.bf16.msra.mxu0 %v1271_v12  ;;  %1213 = vmatpush3.bf16.msra.mxu1 %v1304_v36 }
  0x23   : > { %1136 = vmatprep.subr.bf16.mxu0 %v1272_v13  ;;  %1214 = vmatprep.subr.bf16.mxu1 %v1305_v37 }
  0x26   : > { %1137 = vmatpush3.bf16.msra.mxu0 %v1273_v14  ;;  %1215 = vmatpush3.bf16.msra.mxu1 %v1305_v37 }
  0x27   : > { %1138 = vmatprep.subr.bf16.mxu0 %v1274_v15  ;;  %1216 = vmatprep.subr.bf16.mxu1 %v1306_v38 }
  0x2a   : > { %1139 = vmatpush3.bf16.msra.mxu0 %v1275_v16  ;;  %1217 = vmatpush3.bf16.msra.mxu1 %v1306_v38 }
  0x2b   : > { %1218 = vmatprep.subr.bf16.mxu1 %v1307_v39 }
  0x2d   : > { %538 = vmatmul.mubr.bf16.vlgmr.msra.gmra.mxu0 %v1276_v18 }
  0x2e   : > { %545 = vmatprep.mubr.bf16.mxu0 %v1279_v20  ;;  %1219 = vmatpush3.bf16.msra.mxu1 %v1307_v39 }
  0x35   : > { %546 = vmatmul.mubr.bf16.gmra.mxu0 %v1281_v22 }
  0x36   : > { %553 = vmatprep.mubr.bf16.mxu0 %v1282_v23 }
  0x3d   : > { %554 = vmatmul.mubr.bf16.gmra.mxu0 %v1284_v24 }
  0x3e   : > { %561 = vmatprep.mubr.bf16.mxu0 %v1285_v25 }
  0x45   : > { %562 = vmatmul.mubr.bf16.gmra.mxu0 %v1287_v26 }
  0x46   : > { %569 = vmatprep.mubr.bf16.mxu0 %v1288_v27 }
  0x4d   : > { %570 = vmatmul.mubr.bf16.gmra.mxu0 %v1290_v28 }
  0x4e   : > { %577 = vmatprep.mubr.bf16.mxu0 %v1291_v29 }
  0x55   : > { %578 = vmatmul.mubr.bf16.gmra.mxu0 %v1293_v30 }
  0x56   : > { %585 = vmatprep.mubr.bf16.mxu0 %v1294_v31 }
  0x5d   : > { %586 = vmatmul.mubr.bf16.gmra.mxu0 %v1296_v32 }
  0x5e   : > { %593 = vmatprep.mubr.bf16.mxu0 %v1297_v33 }
  0x65   : > { %594 = vmatmul.mubr.bf16.gmra.mxu0 %v1299_v34 }
  0xed   : > { %v1140_v40 = vpop.f32.mrf.mxu0 }
  0xef   : > { %v1141_v41 = vpop.f32.mrf.mxu0 }
  0xf0   : > { %v1142_v42 = vadd.f32 %v1141_v41, %v1140_v40 }
  0xf1   : > { %v1143_v43 = vpop.f32.mrf.mxu0 }
  0xf2   : > { %v602_v47 = vadd.f32 %v1142_v42, %v1474_v44 }
  0xf3   : > { %v1144_v45 = vpop.f32.mrf.mxu0 }
  0xf4   : > { %v1145_v46 = vadd.f32 %v1144_v45, %v1143_v43  ;;  %v653_v52 = vmax.f32 %v602_v47, 0.0 }
  0xf5   : > { %v1146_v48 = vpop.f32.mrf.mxu0 }
  0xf6   : > { %v603_v49 = vadd.f32 %v1145_v46, %v1474_v44 }
  0xf7   : > { %v1147_v50 = vpop.f32.mrf.mxu0 }
  0xf8   : > { %v1148_v51 = vadd.f32 %v1147_v50, %v1146_v48  ;;  %v654_v53 = vmax.f32 %v603_v49, 0.0 }
  0xf9   : > { %v1149_v54 = vpop.f32.mrf.mxu0 }
  0xfa   : > { %v669_v55 = vpack.c.bf16 %v654_v53, %v653_v52  ;;  %v604_v57 = vadd.f32 %v1148_v51, %v1474_v44 }
  0xfb   : > { %v1150_v56 = vpop.f32.mrf.mxu0 }
  0xfc   : > { %v1151_v58 = vadd.f32 %v1150_v56, %v1149_v54  ;;  %1220 = vmatprep.mubr.bf16.mxu1 %v669_v55  ;;  %v655_v62 = vmax.f32 %v604_v57, 0.0 }
  0xfd   : > { %v1152_v59 = vpop.f32.mrf.mxu0 }
  0xfe   : > { %v605_v60 = vadd.f32 %v1151_v58, %v1474_v44 }
  0xff   : > { %v1153_v61 = vpop.f32.mrf.mxu0 }
 0x100   : > { %v656_v63 = vmax.f32 %v605_v60, 0.0  ;;  %v1154_v0 = vadd.f32 %v1153_v61, %v1152_v59 }
 0x101   : > { %v1155_v1 = vpop.f32.mrf.mxu0 }
 0x102   : > { %v670_v2 = vpack.c.bf16 %v656_v63, %v655_v62  ;;  %v606_v4 = vadd.f32 %v1154_v0, %v1474_v44 }
 0x103   : > { %v1156_v3 = vpop.f32.mrf.mxu0 }
 0x104   : > { %v1157_v5 = vadd.f32 %v1156_v3, %v1155_v1  ;;  %1221 = vmatmul.mubr.bf16.vlgmr.msra.gmra.mxu1 %v670_v2  ;;  %v657_v9 = vmax.f32 %v606_v4, 0.0 }
 0x105   : > { %v1158_v6 = vpop.f32.mrf.mxu0 }
 0x106   : > { %v607_v7 = vadd.f32 %v1157_v5, %v1474_v44 }
 0x107   : > { %v1159_v8 = vpop.f32.mrf.mxu0 }
 0x108   : > { %v658_v10 = vmax.f32 %v607_v7, 0.0  ;;  %v1160_v11 = vadd.f32 %v1159_v8, %v1158_v6 }
 0x109   : > { %v1161_v12 = vpop.f32.mrf.mxu0 }
 0x10a   : > { %v671_v13 = vpack.c.bf16 %v658_v10, %v657_v9  ;;  %v608_v15 = vadd.f32 %v1160_v11, %v1474_v44 }
 0x10b   : > { %v1162_v14 = vpop.f32.mrf.mxu0 }
 0x10c   : > { %v1163_v16 = vadd.f32 %v1162_v14, %v1161_v12  ;;  %1224 = vmatprep.mubr.bf16.mxu1 %v671_v13  ;;  %v659_v20 = vmax.f32 %v608_v15, 0.0 }
 0x10d   : > { %v1164_v17 = vpop.f32.mrf.mxu0 }
 0x10e   : > { %v609_v18 = vadd.f32 %v1163_v16, %v1474_v44 }
 0x10f   : > { %v1165_v19 = vpop.f32.mrf.mxu0 }
 0x110   : > { %v660_v21 = vmax.f32 %v609_v18, 0.0  ;;  %v1166_v22 = vadd.f32 %v1165_v19, %v1164_v17 }
 0x111   : > { %v1167_v23 = vpop.f32.mrf.mxu0 }
 0x112   : > { %v672_v24 = vpack.c.bf16 %v660_v21, %v659_v20  ;;  %v610_v26 = vadd.f32 %v1166_v22, %v1474_v44 }
 0x113   : > { %v1168_v25 = vpop.f32.mrf.mxu0 }
 0x114   : > { %v1169_v27 = vadd.f32 %v1168_v25, %v1167_v23  ;;  %1225 = vmatmul.mubr.bf16.gmra.mxu1 %v672_v24  ;;  %v661_v31 = vmax.f32 %v610_v26, 0.0 }
 0x115   : > { %v1170_v28 = vpop.f32.mrf.mxu0 }
 0x116   : > { %v611_v29 = vadd.f32 %v1169_v27, %v1474_v44 }
 0x117   : > { %v1171_v30 = vpop.f32.mrf.mxu0 }
 0x118   : > { %v662_v32 = vmax.f32 %v611_v29, 0.0  ;;  %v1172_v33 = vadd.f32 %v1171_v30, %v1170_v28 }
 0x119   : > { %v1173_v34 = vpop.f32.mrf.mxu0 }
 0x11a   : > { %v673_v35 = vpack.c.bf16 %v662_v32, %v661_v31  ;;  %v612_v37 = vadd.f32 %v1172_v33, %v1474_v44 }
 0x11b   : > { %v1174_v36 = vpop.f32.mrf.mxu0 }
 0x11c   : > { %v1175_v38 = vadd.f32 %v1174_v36, %v1173_v34  ;;  %1228 = vmatprep.mubr.bf16.mxu1 %v673_v35  ;;  %v663_v42 = vmax.f32 %v612_v37, 0.0 }
 0x11d   : > { %v1176_v39 = vpop.f32.mrf.mxu0 }
 0x11e   : > { %v613_v40 = vadd.f32 %v1175_v38, %v1474_v44 }
 0x11f   : > { %v1177_v41 = vpop.f32.mrf.mxu0 }
 0x120   : > { %v664_v43 = vmax.f32 %v613_v40, 0.0  ;;  %v1178_v45 = vadd.f32 %v1177_v41, %v1176_v39 }
 0x121   : > { %v1179_v46 = vpop.f32.mrf.mxu0 }
 0x122   : > { %v674_v47 = vpack.c.bf16 %v664_v43, %v663_v42  ;;  %v614_v49 = vadd.f32 %v1178_v45, %v1474_v44 }
 0x123   : > { %v1180_v48 = vpop.f32.mrf.mxu0 }
 0x124   : > { %v1181_v50 = vadd.f32 %v1180_v48, %v1179_v46  ;;  %1229 = vmatmul.mubr.bf16.gmra.mxu1 %v674_v47  ;;  %v665_v54 = vmax.f32 %v614_v49, 0.0 }
 0x125   : > { %v1182_v51 = vpop.f32.mrf.mxu0 }
 0x126   : > { %v615_v52 = vadd.f32 %v1181_v50, %v1474_v44 }
 0x127   : > { %v1183_v53 = vpop.f32.mrf.mxu0 }
 0x128   : > { %v666_v55 = vmax.f32 %v615_v52, 0.0  ;;  %v1184_v56 = vadd.f32 %v1183_v53, %v1182_v51 }
 0x129   : > { %v1185_v57 = vpop.f32.mrf.mxu0 }
 0x12a   : > { %v675_v58 = vpack.c.bf16 %v666_v55, %v665_v54  ;;  %v616_v60 = vadd.f32 %v1184_v56, %v1474_v44 }
 0x12b   : > { %v1186_v59 = vpop.f32.mrf.mxu0 }
 0x12c   : > { %v1187_v61 = vadd.f32 %v1186_v59, %v1185_v57  ;;  %1232 = vmatprep.mubr.bf16.mxu1 %v675_v58  ;;  %v667_v63 = vmax.f32 %v616_v60, 0.0 }
 0x12e   : > { %v617_v62 = vadd.f32 %v1187_v61, %v1474_v44 }
 0x130   : > { %v668_v0 = vmax.f32 %v617_v62, 0.0 }
 0x132   : > { %v676_v1 = vpack.c.bf16 %v668_v0, %v667_v63 }
 0x134   : > { %1233 = vmatmul.mubr.bf16.gmra.mxu1 %v676_v1 }
 0x1c4   : > { %v1222_v2 = vpop.f32.mrf.mxu1 }
 0x1c6   : > { %v775_v3 = vpop.f32.mrf.mxu1 }
 0x1c8   : > { %v1223_v4 = vpop.f32.mrf.mxu1 }
 0x1c9   : > { %v1085_v5 = vpack.c.bf16 %v1223_v4, %v1222_v2 }
 0x1ca   : > { %v778_v6 = vpop.f32.mrf.mxu1 }
 0x1cb   : > { %1117 = vst [vmem:[%s230_s7 + $0x8] sm:$0xff] %v1085_v5   ;;  %v1080_v7 = vpack.c.bf16 %v778_v6, %v775_v3 }
 0x1cd   : > { %1081 = vst [vmem:[%s230_s7] sm:$0xff] %v1080_v7  }
 0x1d4   : > { %v1226_v8 = vpop.f32.mrf.mxu1 }
 0x1d6   : > { %v791_v9 = vpop.f32.mrf.mxu1 }
 0x1d8   : > { %v1227_v44 = vpop.f32.mrf.mxu1 }
 0x1d9   : > { %v1095_v10 = vpack.c.bf16 %v1227_v44, %v1226_v8 }
 0x1da   : > { %v794_v11 = vpop.f32.mrf.mxu1 }
 0x1db   : > { %1119 = vst [vmem:[%s230_s7 + $0x18] sm:$0xff] %v1095_v10   ;;  %v1090_v12 = vpack.c.bf16 %v794_v11, %v791_v9 }
 0x1dd   : > { %1118 = vst [vmem:[%s230_s7 + $0x10] sm:$0xff] %v1090_v12  }
 0x1e4   : > { %v1230_v13 = vpop.f32.mrf.mxu1 }
 0x1e6   : > { %v807_v14 = vpop.f32.mrf.mxu1 }
 0x1e8   : > { %v1231_v15 = vpop.f32.mrf.mxu1 }
 0x1e9   : > { %v1105_v16 = vpack.c.bf16 %v1231_v15, %v1230_v13 }
 0x1ea   : > { %v810_v17 = vpop.f32.mrf.mxu1 }
 0x1eb   : > { %1121 = vst [vmem:[%s230_s7 + $0x28] sm:$0xff] %v1105_v16   ;;  %v1100_v18 = vpack.c.bf16 %v810_v17, %v807_v14 }
 0x1ed   : > { %1120 = vst [vmem:[%s230_s7 + $0x20] sm:$0xff] %v1100_v18  }
 0x1f4   : > { %v1234_v19 = vpop.f32.mrf.mxu1 }
 0x1f6   : > { %v823_v20 = vpop.f32.mrf.mxu1 }
 0x1f8   : > { %v1235_v21 = vpop.f32.mrf.mxu1 }
 0x1f9   : > { %v1115_v22 = vpack.c.bf16 %v1235_v21, %v1234_v19 }
 0x1fa   : > { %v826_v23 = vpop.f32.mrf.mxu1 }
 0x1fb   : > { %1123 = vst [vmem:[%s230_s7 + $0x38] sm:$0xff] %v1115_v22   ;;  %v1110_v24 = vpack.c.bf16 %v826_v23, %v823_v20 }
 0x1fd   : > { %1122 = vst [vmem:[%s230_s7 + $0x30] sm:$0xff] %v1110_v24  }
 0x1fe PF: > { %s14_s17 = sadd.s32 1, %s1330_s17   ;;  %s1510_s15 = smov %s1326_s16 }
 0x1ff   : > { %p11_p5 = scmp.ge.s32.totalorder %s14_s17, 4   ;;  %s1511_s16 = smov %s1513_s18 }
 0x201   :  { %13 = sbr.rel (!%p11_p5) target bundleno = 2 (0x2), region = 75 }

// kernel: gnn_forward.3
= control target key start
LH: loop header
LB: loop body
LE: loop exit
PB: predicated region body
PF: predicated region fallthrough
CT: control target
= control target key end

     0   :  { %s1208_s12 = smov 0   ;;  %s1210_s13 = smov 0   ;;  %s1536_s0 = inlined_call_operand.vmem [shape: bf16[256,256], index: 0, kind: input, shape index: {}]   ;;  %s1537_s1 = inlined_call_operand.vmem [shape: bf16[256,128], index: 1, kind: input, shape index: {}]   ;;  %s1538_s2 = inlined_call_operand.vmem [shape: f32[1,128], index: 2, kind: input, shape index: {}]   ;;  %s1539_s3 = inlined_call_operand.vmem [shape: f32[256,128], index: 3, kind: output, shape index: {}]  }
   0x1   :  { %s1212_s14 = smov 0  }
   0x2 LB: > { %s25_s15 = sadd.s32 1, %s1182_s13  ;;  %p914_p0 = scmp.ge.s32.totalorder %s1186_s14, 1  ;;  %s1186_s14 = sphi %s1212_s14, %s13_s14   ;;  %s1182_s13 = sphi %s1210_s13, %s1541_s13   ;;  %s1178_s12 = sphi %s1208_s12, %s1540_s12  }
   0x3   : > { %p27_p1 = scmp.ge.s32.totalorder %s25_s15, 2  ;;  %p158_p2 = scmp.lt.s32.totalorder %s1186_s14, 3 }
   0x5   : > { %s1543_s15 = smov (%p27_p1, %s25_s15), 0  ;;  %p159_p3 = pnand %p914_p0, %p158_p2 }
   0x6   : > { %s915_s18 = sshll.u32 (!%p159_p3), %s1178_s12, 4 }
   0x7   : > { %162 = sbr.rel (%p159_p3) target bundleno = 596 (0x254), region = 32  ;;  %p189_p4 = scmp.lt.s32.totalorder (!%p159_p3), %s915_s18, 31 }
   0xc   : > { %v1060_v0 = vld [vmem:[%s1537_s1 + $0x78] sm:$0xff]   ;;  %v1062_v2 = vld [vmem:[%s1537_s1 + $0x70] sm:$0xff]   ;;  %v1064_v4 = vld [vmem:[%s1537_s1 + $0x68] sm:$0xff]   ;;  %s1545_s18 = smov (!%p189_p4, %s915_s18), 31  ;;  %v626_v32 = vlaneseq }
   0xd   : > { %v1061_v1 = vld [vmem:[%s1537_s1 + $0x38] sm:$0xff]   ;;  %956 = vmatprep.subr.bf16.mxu0 %v1060_v0  ;;  %1020 = vmatprep.subr.bf16.mxu1 %v1060_v0  ;;  %v1063_v3 = vld [vmem:[%s1537_s1 + $0x30] sm:$0xff]   ;;  %v1065_v5 = vld [vmem:[%s1537_s1 + $0x28] sm:$0xff]   ;;  %s955_s6 = sshll.u32 %s1545_s18, 3 }
   0xe   : > { %957 = vmatpush3.bf16.msra.mxu0 %v1061_v1  ;;  %1028 = vmatpush3.bf16.msra.mxu1 %v1061_v1  ;;  %v1066_v6 = vld [vmem:[%s1537_s1 + $0x60] sm:$0xff]   ;;  %v1068_v8 = vld [vmem:[%s1537_s1 + $0x58] sm:$0xff]   ;;  %s1261_s11 = scalar_lea.vmem %s1536_s0, %s955_s6  ;;  %v1070_v10 = vld [vmem:[%s1537_s1 + $0x50] sm:$0xff]   ;;  %v1300_v35 = vand.u32 127, %v626_v32  ;;  %s1461_s8 = scalar_lea.vmem %s1539_s3, %s955_s6 }
   0xf   : > { %958 = vmatprep.subr.bf16.mxu0 %v1062_v2  ;;  %1021 = vmatprep.subr.bf16.mxu1 %v1062_v2  ;;  %v1067_v7 = vld [vmem:[%s1537_s1 + $0x20] sm:$0xff]   ;;  %v1069_v9 = vld [vmem:[%s1537_s1 + $0x18] sm:$0xff]   ;;  %v1071_v13 = vld [vmem:[%s1537_s1 + $0x10] sm:$0xff]  }
  0x10   : > { %v1078_v11 = vld [vmem:[%s1261_s11 + $0x4] ss:$8 sps:$4 sm:$0xff]   ;;  %v1076_v18 = vld [vmem:[%s1261_s11] ss:$8 sps:$4 sm:$0xff]   ;;  %v1082_v20 = vld [vmem:[%s1261_s11 + $0x14] ss:$8 sps:$4 sm:$0xff]  }
  0x11   : > { %v1081_v12 = vld [vmem:[%s1261_s11 + $0x44] ss:$8 sps:$4 sm:$0xff]   ;;  %510 = vmatprep.mubr.bf16.mxu0 %v1078_v11  ;;  %v1079_v19 = vld [vmem:[%s1261_s11 + $0x40] ss:$8 sps:$4 sm:$0xff]   ;;  %v1085_v21 = vld [vmem:[%s1261_s11 + $0x54] ss:$8 sps:$4 sm:$0xff]  }
  0x12   : > { %959 = vmatpush3.bf16.msra.mxu0 %v1063_v3  ;;  %1029 = vmatpush3.bf16.msra.mxu1 %v1063_v3  ;;  %v1072_v14 = vld [vmem:[%s1537_s1 + $0x48] sm:$0xff]   ;;  %v1074_v16 = vld [vmem:[%s1537_s1 + $0x40] sm:$0xff]   ;;  %v1084_v22 = vld [vmem:[%s1261_s11 + $0x10] ss:$8 sps:$4 sm:$0xff]   ;;  %vm628_vm0 = vcmp.lt.s32.totalorder %v1300_v35, 4 }
  0x13   : > { %960 = vmatprep.subr.bf16.mxu0 %v1064_v4  ;;  %1022 = vmatprep.subr.bf16.mxu1 %v1064_v4  ;;  %v1073_v15 = vld [vmem:[%s1537_s1 + $0x8] sm:$0xff]   ;;  %v1075_v17 = vld [vmem:[%s1537_s1] sm:$0xff]   ;;  %v1087_v23 = vld [vmem:[%s1261_s11 + $0x50] ss:$8 sps:$4 sm:$0xff]  }
  0x14   : > { %542 = vmatprep.mubr.bf16.mxu1 %v1081_v12  ;;  %v1088_v24 = vld [vmem:[%s1261_s11 + $0x24] ss:$8 sps:$4 sm:$0xff]   ;;  %v1090_v26 = vld [vmem:[%s1261_s11 + $0x20] ss:$8 sps:$4 sm:$0xff]   ;;  %v1094_v28 = vld [vmem:[%s1261_s11 + $0x34] ss:$8 sps:$4 sm:$0xff]  }
  0x15   : > { %v1091_v25 = vld [vmem:[%s1261_s11 + $0x64] ss:$8 sps:$4 sm:$0xff]   ;;  %v1093_v27 = vld [vmem:[%s1261_s11 + $0x60] ss:$8 sps:$4 sm:$0xff]   ;;  %v1097_v29 = vld [vmem:[%s1261_s11 + $0x74] ss:$8 sps:$4 sm:$0xff]  }
  0x16   : > { %961 = vmatpush3.bf16.msra.mxu0 %v1065_v5  ;;  %1030 = vmatpush3.bf16.msra.mxu1 %v1065_v5  ;;  %v1096_v30 = vld [vmem:[%s1261_s11 + $0x30] ss:$8 sps:$4 sm:$0xff]   ;;  %v1305_v36 = vld [vmem:[%s1538_s2] ss:$0 sm:$0xff] }
  0x17   : > { %962 = vmatprep.subr.bf16.mxu0 %v1066_v6  ;;  %1023 = vmatprep.subr.bf16.mxu1 %v1066_v6  ;;  %v1099_v31 = vld [vmem:[%s1261_s11 + $0x70] ss:$8 sps:$4 sm:$0xff]  }
  0x1a   : > { %963 = vmatpush3.bf16.msra.mxu0 %v1067_v7  ;;  %1031 = vmatpush3.bf16.msra.mxu1 %v1067_v7 }
  0x1b   : > { %964 = vmatprep.subr.bf16.mxu0 %v1068_v8  ;;  %1024 = vmatprep.subr.bf16.mxu1 %v1068_v8 }
  0x1e   : > { %965 = vmatpush3.bf16.msra.mxu0 %v1069_v9  ;;  %1032 = vmatpush3.bf16.msra.mxu1 %v1069_v9 }
  0x1f   : > { %966 = vmatprep.subr.bf16.mxu0 %v1070_v10  ;;  %1025 = vmatprep.subr.bf16.mxu1 %v1070_v10 }
  0x22   : > { %967 = vmatpush3.bf16.msra.mxu0 %v1071_v13  ;;  %1033 = vmatpush3.bf16.msra.mxu1 %v1071_v13 }
  0x23   : > { %968 = vmatprep.subr.bf16.mxu0 %v1072_v14  ;;  %1026 = vmatprep.subr.bf16.mxu1 %v1072_v14 }
  0x26   : > { %969 = vmatpush3.bf16.msra.mxu0 %v1073_v15  ;;  %1034 = vmatpush3.bf16.msra.mxu1 %v1073_v15 }
  0x27   : > { %970 = vmatprep.subr.bf16.mxu0 %v1074_v16  ;;  %1027 = vmatprep.subr.bf16.mxu1 %v1074_v16 }
  0x2a   : > { %971 = vmatpush3.bf16.msra.mxu0 %v1075_v17  ;;  %1035 = vmatpush3.bf16.msra.mxu1 %v1075_v17 }
  0x2d   : > { %511 = vmatmul.mubr.bf16.vlgmr.msra.gmra.mxu0 %v1076_v18  ;;  %543 = vmatmul.mubr.bf16.vlgmr.msra.gmra.mxu1 %v1079_v19 }
  0x2e   : > { %518 = vmatprep.mubr.bf16.mxu0 %v1082_v20  ;;  %550 = vmatprep.mubr.bf16.mxu1 %v1085_v21 }
  0x35   : > { %519 = vmatmul.mubr.bf16.gmra.mxu0 %v1084_v22  ;;  %551 = vmatmul.mubr.bf16.gmra.mxu1 %v1087_v23 }
  0x36   : > { %526 = vmatprep.mubr.bf16.mxu0 %v1088_v24  ;;  %558 = vmatprep.mubr.bf16.mxu1 %v1091_v25 }
  0x3d   : > { %527 = vmatmul.mubr.bf16.gmra.mxu0 %v1090_v26  ;;  %559 = vmatmul.mubr.bf16.gmra.mxu1 %v1093_v27 }
  0x3e   : > { %534 = vmatprep.mubr.bf16.mxu0 %v1094_v28  ;;  %566 = vmatprep.mubr.bf16.mxu1 %v1097_v29 }
  0x45   : > { %535 = vmatmul.mubr.bf16.gmra.mxu0 %v1096_v30  ;;  %567 = vmatmul.mubr.bf16.gmra.mxu1 %v1099_v31 }
  0xed   : > { %v972_v33 = vpop.f32.mrf.mxu0  ;;  %v996_v34 = vpop.f32.mrf.mxu1 }
  0xef   : > { %v973_v37 = vpop.f32.mrf.mxu0  ;;  %v997_v38 = vpop.f32.mrf.mxu1 }
  0xf0   : > { %v974_v39 = vadd.f32 %v973_v37, %v972_v33  ;;  %v998_v40 = vadd.f32 %v997_v38, %v996_v34 }
  0xf1   : > { %v975_v41 = vpop.f32.mrf.mxu0  ;;  %v999_v42 = vpop.f32.mrf.mxu1 }
  0xf2   : > { %v575_v43 = vadd.f32 %v974_v39, %v1305_v36  ;;  %v583_v44 = vadd.f32 %v998_v40, %v1305_v36 }
  0xf3   : > { %v976_v45 = vpop.f32.mrf.mxu0  ;;  %v1000_v46 = vpop.f32.mrf.mxu1 }
  0xf4   : > { %v977_v47 = vadd.f32 %v976_v45, %v975_v41  ;;  %v1001_v48 = vadd.f32 %v1000_v46, %v999_v42  ;;  %v1312_v49 = vsel %vm628_vm0, %v575_v43, -inf  ;;  %v1318_v55 = vsel %vm628_vm0, %v583_v44, -inf }
  0xf5   : > { %v978_v50 = vpop.f32.mrf.mxu0  ;;  %v1002_v51 = vpop.f32.mrf.mxu1  ;;  %645 = vmax.xlane.f32.xlu0 %v1312_v49 }
  0xf6   : > { %v584_v52 = vadd.f32 %v1001_v48, %v1305_v36  ;;  %v576_v56 = vadd.f32 %v977_v47, %v1305_v36 }
  0xf7   : > { %v979_v53 = vpop.f32.mrf.mxu0  ;;  %v1003_v54 = vpop.f32.mrf.mxu1 }
  0xf8   : > { %v980_v57 = vadd.f32 %v979_v53, %v978_v50  ;;  %v1004_v58 = vadd.f32 %v1003_v54, %v1002_v51  ;;  %v1323_v59 = vsel %vm628_vm0, %v584_v52, -inf  ;;  %v1335_v5 = vsel %vm628_vm0, %v576_v56, -inf }
  0xf9   : > { %v981_v60 = vpop.f32.mrf.mxu0  ;;  %v1005_v61 = vpop.f32.mrf.mxu1  ;;  %663 = vmax.xlane.f32.xlu1 %v1323_v59  ;;  %661 = vmax.xlane.f32.xlu0 %v1318_v55 }
  0xfa   : > { %v577_v62 = vadd.f32 %v980_v57, %v1305_v36  ;;  %v585_v63 = vadd.f32 %v1004_v58, %v1305_v36 }
  0xfb   : > { %v982_v0 = vpop.f32.mrf.mxu0  ;;  %v1006_v1 = vpop.f32.mrf.mxu1 }
  0xfc   : > { %v983_v2 = vadd.f32 %v982_v0, %v981_v60  ;;  %v1007_v3 = vadd.f32 %v1006_v1, %v1005_v61  ;;  %v1331_v4 = vsel %vm628_vm0, %v577_v62, -inf  ;;  %v1342_v9 = vsel %vm628_vm0, %v585_v63, -inf }
  0xfd   : > { %v984_v6 = vpop.f32.mrf.mxu0  ;;  %v1008_v7 = vpop.f32.mrf.mxu1  ;;  %649 = vmax.xlane.f32.xlu1 %v1331_v4  ;;  %647 = vmax.xlane.f32.xlu0 %v1335_v5 }
  0xfe   : > { %v578_v8 = vadd.f32 %v983_v2, %v1305_v36  ;;  %v586_v12 = vadd.f32 %v1007_v3, %v1305_v36 }
  0xff   : > { %v985_v10 = vpop.f32.mrf.mxu0  ;;  %v1009_v11 = vpop.f32.mrf.mxu1 }
 0x100   : > { %v986_v13 = vadd.f32 %v985_v10, %v984_v6  ;;  %v1010_v14 = vadd.f32 %v1009_v11, %v1008_v7  ;;  %v1347_v15 = vsel %vm628_vm0, %v578_v8, -inf  ;;  %v1355_v24 = vsel %vm628_vm0, %v586_v12, -inf }
 0x101   : > { %v987_v16 = vpop.f32.mrf.mxu0  ;;  %v1011_v17 = vpop.f32.mrf.mxu1  ;;  %651 = vmax.xlane.f32.xlu1 %v1347_v15  ;;  %665 = vmax.xlane.f32.xlu0 %v1342_v9 }
 0x102   : > { %v579_v18 = vadd.f32 %v986_v13, %v1305_v36  ;;  %v587_v19 = vadd.f32 %v1010_v14, %v1305_v36 }
 0x103   : > { %v988_v20 = vpop.f32.mrf.mxu0  ;;  %v1012_v21 = vpop.f32.mrf.mxu1 }
 0x104   : > { %v989_v22 = vadd.f32 %v988_v20, %v987_v16  ;;  %v1013_v23 = vadd.f32 %v1012_v21, %v1011_v17  ;;  %v1359_v25 = vsel %vm628_vm0, %v579_v18, -inf  ;;  %v1366_v29 = vsel %vm628_vm0, %v587_v19, -inf }
 0x105   : > { %v990_v26 = vpop.f32.mrf.mxu0  ;;  %v1014_v27 = vpop.f32.mrf.mxu1  ;;  %667 = vmax.xlane.f32.xlu1 %v1355_v24  ;;  %653 = vmax.xlane.f32.xlu0 %v1359_v25 }
 0x106   : > { %v580_v28 = vadd.f32 %v989_v22, %v1305_v36  ;;  %v588_v32 = vadd.f32 %v1013_v23, %v1305_v36 }
 0x107   : > { %v991_v30 = vpop.f32.mrf.mxu0  ;;  %v1015_v31 = vpop.f32.mrf.mxu1 }
 0x108   : > { %v992_v33 = vadd.f32 %v991_v30, %v990_v26  ;;  %v1016_v34 = vadd.f32 %v1015_v31, %v1014_v27  ;;  %v634_v37 = vsel %vm628_vm0, %v580_v28, -inf  ;;  %v642_v46 = vsel %vm628_vm0, %v588_v32, -inf }
 0x109   : > { %v993_v38 = vpop.f32.mrf.mxu0  ;;  %v1017_v39 = vpop.f32.mrf.mxu1  ;;  %655 = vmax.xlane.f32.xlu1 %v634_v37  ;;  %669 = vmax.xlane.f32.xlu0 %v1366_v29 }
 0x10a   : > { %v581_v40 = vadd.f32 %v992_v33, %v1305_v36  ;;  %v589_v41 = vadd.f32 %v1016_v34, %v1305_v36 }
 0x10b   : > { %v994_v42 = vpop.f32.mrf.mxu0  ;;  %v1018_v43 = vpop.f32.mrf.mxu1 }
 0x10c   : > { %v995_v44 = vadd.f32 %v994_v42, %v993_v38  ;;  %v1019_v45 = vadd.f32 %v1018_v43, %v1017_v39  ;;  %v635_v47 = vsel %vm628_vm0, %v581_v40, -inf  ;;  %v1381_v50 = vsel %vm628_vm0, %v589_v41, -inf }
 0x10d   : > { %671 = vmax.xlane.f32.xlu1 %v642_v46  ;;  %657 = vmax.xlane.f32.xlu0 %v635_v47 }
 0x10e   : > { %v582_v48 = vadd.f32 %v995_v44, %v1305_v36  ;;  %v590_v51 = vadd.f32 %v1019_v45, %v1305_v36 }
 0x110   : > { %v1386_v52 = vsel %vm628_vm0, %v582_v48, -inf  ;;  %v1392_v53 = vsel %vm628_vm0, %v590_v51, -inf }
 0x111   : > { %659 = vmax.xlane.f32.xlu1 %v1386_v52  ;;  %673 = vmax.xlane.f32.xlu0 %v1381_v50 }
 0x115   : > { %675 = vmax.xlane.f32.xlu1 %v1392_v53 }
 0x17e   : > { %v646_v54 = vpop.xlane.xlu0 %645 }
 0x17f   : > { %v1396_v56 = vsub.f32 %v1312_v49, %v646_v54 }
 0x181   : > { %v693_v36 = vmul.f32 1.442695, %v1396_v56 }
 0x182   : > { %v664_v57 = vpop.xlane.xlu1 %663  ;;  %v662_v58 = vpop.xlane.xlu0 %661 }
 0x183   : > { %1100 = vpow2.f32 %v693_v36  ;;  %v1400_v60 = vsub.f32 %v1318_v55, %v662_v58  ;;  %v1404_v0 = vsub.f32 %v1323_v59, %v664_v57 }
 0x185   : > { %v709_v61 = vmul.f32 1.442695, %v1400_v60  ;;  %v711_v7 = vmul.f32 1.442695, %v1404_v0 }
 0x186   : > { %v650_v62 = vpop.xlane.xlu1 %649  ;;  %v648_v63 = vpop.xlane.xlu0 %647 }
 0x187   : > { %v1407_v1 = vsub.f32 %v1331_v4, %v650_v62  ;;  %v1410_v49 = vsub.f32 %v1335_v5, %v648_v63  ;;  %1102 = vpow2.f32 %v709_v61 }
 0x189   : > { %v697_v2 = vmul.f32 1.442695, %v1407_v1  ;;  %v695_v3 = vmul.f32 1.442695, %v1410_v49 }
 0x18a   : > { %v652_v55 = vpop.xlane.xlu1 %651  ;;  %v666_v6 = vpop.xlane.xlu0 %665 }
 0x18b   : > { %1104 = vpow2.f32 %v697_v2  ;;  %v1416_v8 = vsub.f32 %v1347_v15, %v652_v55  ;;  %v1419_v59 = vsub.f32 %v1342_v9, %v666_v6 }
 0x18c   : > { %1106 = vpow2.f32 %v695_v3 }
 0x18d   : > { %v713_v4 = vmul.f32 1.442695, %v1419_v59  ;;  %1108 = vpow2.f32 %v711_v7  ;;  %v699_v11 = vmul.f32 1.442695, %v1416_v8 }
 0x18e   : > { %v668_v5 = vpop.xlane.xlu1 %667  ;;  %v654_v10 = vpop.xlane.xlu0 %653 }
 0x18f   : > { %v1424_v12 = vsub.f32 %v1355_v24, %v668_v5  ;;  %v1427_v13 = vsub.f32 %v1359_v25, %v654_v10  ;;  %1110 = vpow2.f32 %v713_v4 }
 0x190   : > { %v1101_v14 = vpop.eup %1100  ;;  %1112 = vpow2.f32 %v699_v11 }
 0x191   : > { %v701_v15 = vmul.f32 1.442695, %v1427_v13  ;;  %725 = vadd.xlane.f32.xlu0 %v1101_v14  ;;  %v715_v17 = vmul.f32 1.442695, %v1424_v12 }
 0x192   : > { %v656_v9 = vpop.xlane.xlu1 %655  ;;  %v670_v16 = vpop.xlane.xlu0 %669 }
 0x193   : > { %v1431_v18 = vsub.f32 %v634_v37, %v656_v9  ;;  %v1434_v19 = vsub.f32 %v1366_v29, %v670_v16  ;;  %1114 = vpow2.f32 %v701_v15 }
 0x194   : > { %v1103_v20 = vpop.eup %1102  ;;  %1116 = vpow2.f32 %v715_v17 }
 0x195   : > { %v717_v21 = vmul.f32 1.442695, %v1434_v19  ;;  %741 = vadd.xlane.f32.xlu0 %v1103_v20  ;;  %v703_v24 = vmul.f32 1.442695, %v1431_v18 }
 0x196   : > { %v672_v22 = vpop.xlane.xlu1 %671  ;;  %v658_v23 = vpop.xlane.xlu0 %657 }
 0x197   : > { %v1438_v25 = vsub.f32 %v642_v46, %v672_v22  ;;  %v1440_v26 = vsub.f32 %v635_v47, %v658_v23  ;;  %1118 = vpow2.f32 %v717_v21 }
 0x198   : > { %v1105_v27 = vpop.eup %1104  ;;  %1120 = vpow2.f32 %v703_v24 }
 0x199   : > { %v1107_v28 = vpop.eup %1106  ;;  %v705_v29 = vmul.f32 1.442695, %v1440_v26  ;;  %729 = vadd.xlane.f32.xlu0 %v1105_v27  ;;  %v719_v32 = vmul.f32 1.442695, %v1438_v25 }
 0x19a   : > { %727 = vadd.xlane.f32.xlu1 %v1107_v28  ;;  %v660_v30 = vpop.xlane.xlu1 %659  ;;  %v674_v31 = vpop.xlane.xlu0 %673 }
 0x19b   : > { %v1445_v33 = vsub.f32 %v1381_v50, %v674_v31  ;;  %v1109_v34 = vpop.eup %1108  ;;  %1122 = vpow2.f32 %v705_v29  ;;  %v1448_v37 = vsub.f32 %v1386_v52, %v660_v30 }
 0x19c   : > { %v1111_v38 = vpop.eup %1110  ;;  %1124 = vpow2.f32 %v719_v32 }
 0x19d   : > { %v721_v39 = vmul.f32 1.442695, %v1445_v33  ;;  %745 = vadd.xlane.f32.xlu0 %v1111_v38  ;;  %v1113_v41 = vpop.eup %1112  ;;  %v707_v42 = vmul.f32 1.442695, %v1448_v37 }
 0x19e   : > { %743 = vadd.xlane.f32.xlu1 %v1109_v34  ;;  %v676_v40 = vpop.xlane.xlu1 %675 }
 0x19f   : > { %1126 = vpow2.f32 %v721_v39  ;;  %v1453_v43 = vsub.f32 %v1392_v53, %v676_v40 }
 0x1a0   : > { %v1115_v44 = vpop.eup %1114  ;;  %1128 = vpow2.f32 %v707_v42 }
 0x1a1   : > { %733 = vadd.xlane.f32.xlu0 %v1115_v44  ;;  %v1117_v45 = vpop.eup %1116  ;;  %v723_v46 = vmul.f32 1.442695, %v1453_v43 }
 0x1a2   : > { %731 = vadd.xlane.f32.xlu1 %v1113_v41 }
 0x1a3   : > { %1130 = vpow2.f32 %v723_v46 }
 0x1a4   : > { %v1119_v47 = vpop.eup %1118 }
 0x1a5   : > { %749 = vadd.xlane.f32.xlu0 %v1119_v47  ;;  %v1121_v48 = vpop.eup %1120 }
 0x1a6   : > { %747 = vadd.xlane.f32.xlu1 %v1117_v45 }
 0x1a8   : > { %v1123_v50 = vpop.eup %1122 }
 0x1a9   : > { %737 = vadd.xlane.f32.xlu0 %v1123_v50  ;;  %v1125_v51 = vpop.eup %1124 }
 0x1aa   : > { %735 = vadd.xlane.f32.xlu1 %v1121_v48 }
 0x1ac   : > { %v1127_v52 = vpop.eup %1126 }
 0x1ad   : > { %753 = vadd.xlane.f32.xlu0 %v1127_v52  ;;  %v1129_v53 = vpop.eup %1128 }
 0x1ae   : > { %751 = vadd.xlane.f32.xlu1 %v1125_v51 }
 0x1b0   : > { %v1131_v54 = vpop.eup %1130 }
 0x1b2   : > { %739 = vadd.xlane.f32.xlu1 %v1129_v53 }
 0x1b6   : > { %755 = vadd.xlane.f32.xlu1 %v1131_v54 }
 0x21a   : > { %v726_v36 = vpop.xlane.xlu0 %725 }
 0x21b   : > { %1132 = vlog2.f32 %v726_v36 }
 0x21e   : > { %v742_v57 = vpop.xlane.xlu0 %741 }
 0x21f   : > { %1134 = vlog2.f32 %v742_v57 }
 0x222   : > { %v730_v61 = vpop.xlane.xlu0 %729 }
 0x223   : > { %v728_v58 = vpop.xlane.xlu1 %727 }
 0x224   : > { %1136 = vlog2.f32 %v728_v58 }
 0x225   : > { %1138 = vlog2.f32 %v730_v61 }
 0x226   : > { %v746_v63 = vpop.xlane.xlu0 %745 }
 0x227   : > { %v744_v62 = vpop.xlane.xlu1 %743 }
 0x228   : > { %v1133_v2 = vpop.eup %1132  ;;  %1140 = vlog2.f32 %v744_v62 }
 0x229   : > { %v758_v3 = vmul.f32 0.6931472, %v1133_v2  ;;  %1142 = vlog2.f32 %v746_v63 }
 0x22a   : > { %v734_v7 = vpop.xlane.xlu0 %733 }
 0x22b   : > { %v789_v55 = vsub.f32 %v1396_v56, %v758_v3  ;;  %v732_v6 = vpop.xlane.xlu1 %731 }
 0x22c   : > { %1144 = vlog2.f32 %v732_v6  ;;  %v1135_v4 = vpop.eup %1134 }
 0x22d   : > { %v805_v5 = vsel %vm628_vm0, %v789_v55, 0.0  ;;  %1146 = vlog2.f32 %v734_v7  ;;  %v774_v10 = vmul.f32 0.6931472, %v1135_v4 }
 0x22e   : > { %821 = vst [vmem:[%s1461_s8] sm:$0xff] %v805_v5  ;;  %v750_v14 = vpop.xlane.xlu0 %749 }
 0x22f   : > { %v748_v11 = vpop.xlane.xlu1 %747  ;;  %v797_v15 = vsub.f32 %v1400_v60, %v774_v10 }
 0x230   : > { %1148 = vlog2.f32 %v748_v11 }
 0x231   : > { %v1137_v9 = vpop.eup %1136  ;;  %1150 = vlog2.f32 %v750_v14  ;;  %v813_v16 = vsel %vm628_vm0, %v797_v15, 0.0 }
 0x232   : > { %v1139_v56 = vpop.eup %1138  ;;  %v760_v17 = vmul.f32 0.6931472, %v1137_v9  ;;  %829 = vst [vmem:[%s1461_s8 + $0x40] sm:$0xff] %v813_v16  ;;  %v738_v22 = vpop.xlane.xlu0 %737 }
 0x233   : > { %v762_v20 = vmul.f32 0.6931472, %v1139_v56  ;;  %v736_v21 = vpop.xlane.xlu1 %735 }
 0x234   : > { %v790_v23 = vsub.f32 %v1410_v49, %v760_v17  ;;  %1152 = vlog2.f32 %v736_v21 }
 0x235   : > { %v1141_v24 = vpop.eup %1140  ;;  %v791_v60 = vsub.f32 %v1407_v1, %v762_v20  ;;  %1154 = vlog2.f32 %v738_v22 }
 0x236   : > { %v1143_v27 = vpop.eup %1142  ;;  %v806_v28 = vsel %vm628_vm0, %v790_v23, 0.0  ;;  %v776_v29 = vmul.f32 0.6931472, %v1141_v24  ;;  %v754_v34 = vpop.xlane.xlu0 %753 }
 0x237   : > { %822 = vst [vmem:[%s1461_s8 + $0x8] sm:$0xff] %v806_v28  ;;  %v807_v30 = vsel %vm628_vm0, %v791_v60, 0.0  ;;  %v778_v31 = vmul.f32 0.6931472, %v1143_v27  ;;  %v752_v32 = vpop.xlane.xlu1 %751 }
 0x238   : > { %823 = vst [vmem:[%s1461_s8 + $0x10] sm:$0xff] %v807_v30  ;;  %v798_v49 = vsub.f32 %v1404_v0, %v776_v29  ;;  %1156 = vlog2.f32 %v752_v32 }
 0x239   : > { %v1145_v1 = vpop.eup %1144  ;;  %v799_v38 = vsub.f32 %v1419_v59, %v778_v31  ;;  %1158 = vlog2.f32 %v754_v34 }
 0x23a   : > { %v1147_v39 = vpop.eup %1146  ;;  %v814_v40 = vsel %vm628_vm0, %v798_v49, 0.0  ;;  %v764_v41 = vmul.f32 0.6931472, %v1145_v1 }
 0x23b   : > { %830 = vst [vmem:[%s1461_s8 + $0x48] sm:$0xff] %v814_v40  ;;  %v815_v42 = vsel %vm628_vm0, %v799_v38, 0.0  ;;  %v766_v44 = vmul.f32 0.6931472, %v1147_v39  ;;  %v740_v45 = vpop.xlane.xlu1 %739 }
 0x23c   : > { %831 = vst [vmem:[%s1461_s8 + $0x50] sm:$0xff] %v815_v42  ;;  %v792_v0 = vsub.f32 %v1416_v8, %v764_v41  ;;  %1160 = vlog2.f32 %v740_v45 }
 0x23d   : > { %v1149_v46 = vpop.eup %1148  ;;  %v793_v59 = vsub.f32 %v1427_v13, %v766_v44 }
 0x23e   : > { %v1151_v47 = vpop.eup %1150  ;;  %v808_v48 = vsel %vm628_vm0, %v792_v0, 0.0  ;;  %v780_v50 = vmul.f32 0.6931472, %v1149_v46 }
 0x23f   : > { %824 = vst [vmem:[%s1461_s8 + $0x18] sm:$0xff] %v808_v48  ;;  %v809_v51 = vsel %vm628_vm0, %v793_v59, 0.0  ;;  %v782_v52 = vmul.f32 0.6931472, %v1151_v47  ;;  %v756_v53 = vpop.xlane.xlu1 %755 }
 0x240   : > { %825 = vst [vmem:[%s1461_s8 + $0x20] sm:$0xff] %v809_v51  ;;  %v800_v8 = vsub.f32 %v1424_v12, %v780_v50  ;;  %1162 = vlog2.f32 %v756_v53 }
 0x241   : > { %v1153_v54 = vpop.eup %1152  ;;  %v801_v13 = vsub.f32 %v1434_v19, %v782_v52 }
 0x242   : > { %v1155_v36 = vpop.eup %1154  ;;  %v816_v57 = vsel %vm628_vm0, %v800_v8, 0.0  ;;  %v768_v58 = vmul.f32 0.6931472, %v1153_v54 }
 0x243   : > { %832 = vst [vmem:[%s1461_s8 + $0x58] sm:$0xff] %v816_v57  ;;  %v817_v61 = vsel %vm628_vm0, %v801_v13, 0.0  ;;  %v770_v62 = vmul.f32 0.6931472, %v1155_v36 }
 0x244   : > { %833 = vst [vmem:[%s1461_s8 + $0x60] sm:$0xff] %v817_v61  ;;  %v794_v12 = vsub.f32 %v1431_v18, %v768_v58 }
 0x245   : > { %v1157_v63 = vpop.eup %1156  ;;  %v795_v2 = vsub.f32 %v1440_v26, %v770_v62 }
 0x246   : > { %v1159_v19 = vpop.eup %1158  ;;  %v810_v3 = vsel %vm628_vm0, %v794_v12, 0.0  ;;  %v784_v55 = vmul.f32 0.6931472, %v1157_v63 }
 0x247   : > { %826 = vst [vmem:[%s1461_s8 + $0x28] sm:$0xff] %v810_v3  ;;  %v811_v6 = vsel %vm628_vm0, %v795_v2, 0.0  ;;  %v786_v7 = vmul.f32 0.6931472, %v1159_v19 }
 0x248   : > { %827 = vst [vmem:[%s1461_s8 + $0x30] sm:$0xff] %v811_v6  ;;  %v802_v4 = vsub.f32 %v1438_v25, %v784_v55 }
 0x249   : > { %v1161_v18 = vpop.eup %1160  ;;  %v803_v5 = vsub.f32 %v1445_v33, %v786_v7 }
 0x24a   : > { %v818_v26 = vsel %vm628_vm0, %v802_v4, 0.0  ;;  %v772_v10 = vmul.f32 0.6931472, %v1161_v18 }
 0x24b   : > { %834 = vst [vmem:[%s1461_s8 + $0x68] sm:$0xff] %v818_v26  ;;  %v819_v11 = vsel %vm628_vm0, %v803_v5, 0.0 }
 0x24c   : > { %835 = vst [vmem:[%s1461_s8 + $0x70] sm:$0xff] %v819_v11  ;;  %v796_v14 = vsub.f32 %v1448_v37, %v772_v10 }
 0x24d   : > { %v1163_v15 = vpop.eup %1162 }
 0x24e   : > { %v812_v9 = vsel %vm628_vm0, %v796_v14, 0.0  ;;  %v788_v56 = vmul.f32 0.6931472, %v1163_v15 }
 0x24f   : > { %828 = vst [vmem:[%s1461_s8 + $0x38] sm:$0xff] %v812_v9 }
 0x250   : > { %v804_v25 = vsub.f32 %v1453_v43, %v788_v56 }
 0x252   : > { %v820_v33 = vsel %vm628_vm0, %v804_v25, 0.0 }
 0x253   : > { %836 = vst [vmem:[%s1461_s8 + $0x78] sm:$0xff] %v820_v33 }
 0x254 PF: > { %s13_s14 = sadd.s32 1, %s1186_s14   ;;  %s1540_s12 = smov %s1182_s13 }
 0x255   : > { %p10_p5 = scmp.ge.s32.totalorder %s13_s14, 4   ;;  %s1541_s13 = smov %s1543_s15 }
 0x257   :  { %12 = sbr.rel (!%p10_p5) target bundleno = 2 (0x2), region = 71 }

</bundles_post_ra>
